<compile_context>
chip_gen: v7x
topology: tpu7x:2x2x1
jax: 0.10.0
libtpu: 0.0.40
codegen_flags: <defaults>
</compile_context>

<pallas_src>
import jax
import jax.numpy as jnp
from jax.experimental import pallas as pl
from jax.experimental.pallas import tpu as pltpu


def _round_up(v, m):
    return ((v + m - 1) // m) * m


def mlp_kernel(x_ref, w1_ref, b1_ref, w2_ref, b2_ref, wo_ref, bo_ref, out_ref):
    # x:  (TM, 392) f32     w1: (392, Hp) bf16    b1: (1, Hp) f32
    # w2: (Hp, Hp)  bf16    b2: (1, Hp)  f32
    # wo: (1, Hp)   f32     bo: (1, 1)   f32 (SMEM scalar)   out: (TM, 1) f32
    #
    # Cast only the activations to bf16 (per-tile-proportional VPU work) and run
    # native bf16 x bf16 -> f32 MXU matmuls.  This replaces the old per-step
    # weight upcast (fixed weight-sized VPU work + slow f32 matmul path).
    x = x_ref[...].astype(jnp.bfloat16)

    h1 = jnp.dot(x, w1_ref[...], preferred_element_type=jnp.float32) + b1_ref[...]
    h1 = jnp.maximum(h1, 0.0)

    h2 = jnp.dot(h1.astype(jnp.bfloat16), w2_ref[...],
                 preferred_element_type=jnp.float32) + b2_ref[...]
    h2 = jnp.maximum(h2, 0.0)

    # Final Linear(H, 1): VPU elementwise multiply + cross-lane row reduction
    # (XLU slot) instead of an N=1 MXU matmul.  bo comes from SMEM as a scalar.
    out_ref[...] = (jnp.sum(h2 * wo_ref[...], axis=-1, keepdims=True)
                    + bo_ref[0, 0])


def _pick_row_tile(b_pad8, tm):
    """Row tile (multiple of 8): whole batch if small; otherwise <= tm and capped
    so the grid has at least 2 tiles, letting the "parallel" batch axis be split
    across v7x's two TensorCores (single-core v5e/v6e just loop over tiles)."""
    tm = max(8, (tm // 8) * 8)
    if b_pad8 <= 128:
        return b_pad8                      # tiny batch: one tile, no split overhead
    half = _round_up(pl.cdiv(b_pad8, 2), 8)
    return min(tm, half)


def mlp_forward(x_nchw, params, *, tm=1024):
    """x_nchw: (B, C, 14, 14) float32. Returns (B, 1) float32.

    `tm` = batch row tile. Weights are DMA'd once per call (constant index_map,
    single-buffered) and stay VMEM-resident across all batch tiles.
    """
    w1, b1, w2, b2, wo, bo = params
    B = x_nchw.shape[0]
    in_dim = w1.shape[0]
    x_flat = x_nchw.reshape(B, in_dim)     # same as torch .view(B, channel*14*14)

    TM = _pick_row_tile(_round_up(B, 8), tm)
    B_pad = pl.cdiv(B, TM) * TM
    if B_pad != B:
        x_flat = jnp.pad(x_flat, ((0, B_pad - B), (0, 0)))

    # Weights/biases: full-array blocks with constant index_map => VMEM-resident
    # for the whole call; single-buffered since the block never changes.
    def resident(arr):
        return pl.BlockSpec(arr.shape, lambda i: (0,) * arr.ndim,
                            pipeline_mode=pl.Buffered(1))

    out = pl.pallas_call(
        mlp_kernel,
        out_shape=jax.ShapeDtypeStruct((B_pad, 1), jnp.float32),
        grid=(B_pad // TM,),
        in_specs=[
            pl.BlockSpec((TM, in_dim), lambda i: (i, 0)),       # x: tiled over batch
            resident(w1), resident(b1),
            resident(w2), resident(b2),
            resident(wo),
            pl.BlockSpec(memory_space=pltpu.MemorySpace.SMEM),  # bo: scalar in SMEM
        ],
        out_specs=pl.BlockSpec((TM, 1), lambda i: (i, 0)),
        compiler_params=pltpu.CompilerParams(
            dimension_semantics=("parallel",)),                 # megacore on v7x
    )(x_flat, w1, b1, w2, b2, wo, bo)

    return out[:B]


def xavier_uniform(key, fan_in, fan_out):
    # matches torch.nn.init.xavier_uniform_ (gain=1): U(-a, a), a = sqrt(6/(fan_in+fan_out))
    a = (6.0 / (fan_in + fan_out)) ** 0.5
    # returned in (in, out) layout for x @ W
    return jax.random.uniform(key, (fan_in, fan_out), jnp.float32, minval=-a, maxval=a)


def init_params(key, channel=2, hidden_dim=390):
    """One-time host-side init. Hidden dim zero-padded to a multiple of 128
    (390 -> 512): padded W1/wo columns, W2 rows/cols and bias lanes are zero, so
    padded lanes stay exactly 0 through ReLU and contribute nothing -> results
    are numerically identical, but MXU tiles / bf16 weight tiles are dense."""
    in_dim = channel * 14 * 14            # 392
    hp = _round_up(hidden_dim, 128)       # 512
    k1, k2, k3 = jax.random.split(key, 3)

    w1 = (jnp.zeros((in_dim, hp), jnp.float32)
          .at[:, :hidden_dim].set(xavier_uniform(k1, in_dim, hidden_dim))
          .astype(jnp.bfloat16))                                  # streamed bf16
    b1 = jnp.zeros((1, hp), jnp.float32)

    w2 = (jnp.zeros((hp, hp), jnp.float32)
          .at[:hidden_dim, :hidden_dim].set(xavier_uniform(k2, hidden_dim, hidden_dim))
          .astype(jnp.bfloat16))                                  # streamed bf16
    b2 = jnp.zeros((1, hp), jnp.float32)

    # omega_list[0]: Linear(hidden_dim, 1) kept f32, stored as a (1, Hp) row for
    # the in-kernel VPU reduction (tiny: 2 KB).
    wo = (jnp.zeros((1, hp), jnp.float32)
          .at[:, :hidden_dim].set(xavier_uniform(k3, hidden_dim, 1).reshape(1, hidden_dim)))
    bo = jnp.zeros((1, 1), jnp.float32)
    return (w1, b1, w2, b2, wo, bo)


if __name__ == "__main__":
    key = jax.random.PRNGKey(0)
    k_in, k_par, k_big = jax.random.split(key, 3)

    B, C, H, W = 2, 2, 14, 14  # channel=2 (use_color=False), 14x14 input
    x = jax.random.normal(k_in, (B, C, H, W), jnp.float32)
    params = init_params(k_par, channel=C, hidden_dim=390)

    out = jax.block_until_ready(mlp_forward(x, params))
    assert out.shape == (B, 1) and out.dtype == jnp.float32

    # Reference in plain JAX, mirroring the kernel's quantization (bf16 weights
    # and activations into the matmuls, f32 accumulation).
    w1, b1, w2, b2, wo, bo = params

    def ref_fn(xb):
        xf = xb.reshape(xb.shape[0], -1).astype(jnp.bfloat16)
        h = jnp.maximum(jnp.dot(xf, w1, preferred_element_type=jnp.float32) + b1, 0.0)
        h = jnp.maximum(jnp.dot(h.astype(jnp.bfloat16), w2,
                                preferred_element_type=jnp.float32) + b2, 0.0)
        return jnp.sum(h * wo, axis=-1, keepdims=True) + bo

    assert jnp.allclose(out, ref_fn(x), atol=2e-3, rtol=2e-3)

    # Batched path: multi-tile grid (>=2 tiles -> both v7x cores), resident
    # single-buffered weights, ragged batch padded & sliced.
    Bb = 300
    xb = jax.random.normal(k_big, (Bb, C, H, W), jnp.float32)
    outb = jax.block_until_ready(mlp_forward(xb, params))
    assert outb.shape == (Bb, 1) and outb.dtype == jnp.float32
    assert jnp.allclose(outb, ref_fn(xb), atol=2e-3, rtol=2e-3)

    print("KERNEL_OK")
</pallas_src>

<mosaic_0001>
module attributes {stable_mosaic.version = 11 : i64} {
  func.func @mlp_kernel(%arg0: i32, %arg1: memref<8x392xf32, #tpu.memory_space<vmem>>, %arg2: memref<392x512xbf16, #tpu.memory_space<vmem>>, %arg3: memref<1x512xf32, #tpu.memory_space<vmem>>, %arg4: memref<512x512xbf16, #tpu.memory_space<vmem>>, %arg5: memref<1x512xf32, #tpu.memory_space<vmem>>, %arg6: memref<1x512xf32, #tpu.memory_space<vmem>>, %arg7: memref<1x1xf32, #tpu.memory_space<smem>>, %arg8: memref<8x1xf32, #tpu.memory_space<vmem>>) attributes {dimension_semantics = [#tpu.dimension_semantics<parallel>], iteration_bounds = array<i64: 1>, scalar_prefetch = 0 : i64, scratch_operands = 0 : i64, tpu.core_type = #tpu.core_type<tc>, window_params = [{transform_indices = @transform_0, window_bounds = array<i64: 8, 392>}, {pipeline_mode = #tpu.pipeline_mode<synchronous>, transform_indices = @transform_1, window_bounds = array<i64: 392, 512>}, {pipeline_mode = #tpu.pipeline_mode<synchronous>, transform_indices = @transform_2, window_bounds = array<i64: 1, 512>}, {pipeline_mode = #tpu.pipeline_mode<synchronous>, transform_indices = @transform_3, window_bounds = array<i64: 512, 512>}, {pipeline_mode = #tpu.pipeline_mode<synchronous>, transform_indices = @transform_4, window_bounds = array<i64: 1, 512>}, {pipeline_mode = #tpu.pipeline_mode<synchronous>, transform_indices = @transform_5, window_bounds = array<i64: 1, 512>}, {transform_indices = @transform_6, window_bounds = array<i64: 1, 1>}, {transform_indices = @transform_7, window_bounds = array<i64: 8, 1>}]} {
    %c0 = arith.constant 0 : index
    %c0_0 = arith.constant 0 : index
    %0 = vector.load %arg1[%c0, %c0_0] : memref<8x392xf32, #tpu.memory_space<vmem>>, vector<8x392xf32>
    %1 = arith.truncf %0 : vector<8x392xf32> to vector<8x392xbf16>
    %c0_1 = arith.constant 0 : index
    %c0_2 = arith.constant 0 : index
    %2 = vector.load %arg2[%c0_1, %c0_2] : memref<392x512xbf16, #tpu.memory_space<vmem>>, vector<392x512xbf16>
    %cst = arith.constant dense<0.000000e+00> : vector<8x512xf32>
    %3 = tpu.matmul %1, %2, %cst {dimension_numbers = #tpu.dot_dimension_numbers<[1], [0], [0], [1], [0, 0, 1, 1], [], []>} : vector<8x392xbf16>, vector<392x512xbf16>, vector<8x512xf32> -> vector<8x512xf32>
    %c0_3 = arith.constant 0 : index
    %c0_4 = arith.constant 0 : index
    %4 = vector.load %arg3[%c0_3, %c0_4] : memref<1x512xf32, #tpu.memory_space<vmem>>, vector<1x512xf32>
    %5 = vector.broadcast %4 : vector<1x512xf32> to vector<8x512xf32>
    %6 = arith.addf %3, %5 : vector<8x512xf32>
    %cst_5 = arith.constant 0.000000e+00 : f32
    %7 = vector.broadcast %cst_5 : f32 to vector<8x512xf32>
    %8 = arith.maximumf %6, %7 : vector<8x512xf32>
    %9 = arith.truncf %8 : vector<8x512xf32> to vector<8x512xbf16>
    %c0_6 = arith.constant 0 : index
    %c0_7 = arith.constant 0 : index
    %10 = vector.load %arg4[%c0_6, %c0_7] : memref<512x512xbf16, #tpu.memory_space<vmem>>, vector<512x512xbf16>
    %cst_8 = arith.constant dense<0.000000e+00> : vector<8x512xf32>
    %11 = tpu.matmul %9, %10, %cst_8 {dimension_numbers = #tpu.dot_dimension_numbers<[1], [0], [0], [1], [0, 0, 1, 1], [], []>} : vector<8x512xbf16>, vector<512x512xbf16>, vector<8x512xf32> -> vector<8x512xf32>
    %c0_9 = arith.constant 0 : index
    %c0_10 = arith.constant 0 : index
    %12 = vector.load %arg5[%c0_9, %c0_10] : memref<1x512xf32, #tpu.memory_space<vmem>>, vector<1x512xf32>
    %13 = vector.broadcast %12 : vector<1x512xf32> to vector<8x512xf32>
    %14 = arith.addf %11, %13 : vector<8x512xf32>
    %cst_11 = arith.constant 0.000000e+00 : f32
    %15 = vector.broadcast %cst_11 : f32 to vector<8x512xf32>
    %16 = arith.maximumf %14, %15 : vector<8x512xf32>
    %c0_12 = arith.constant 0 : index
    %c0_13 = arith.constant 0 : index
    %17 = vector.load %arg6[%c0_12, %c0_13] : memref<1x512xf32, #tpu.memory_space<vmem>>, vector<1x512xf32>
    %18 = vector.broadcast %17 : vector<1x512xf32> to vector<8x512xf32>
    %19 = arith.mulf %16, %18 : vector<8x512xf32>
    %cst_14 = arith.constant dense<0.000000e+00> : vector<8xf32>
    %20 = vector.multi_reduction <add>, %19, %cst_14 [1] : vector<8x512xf32> to vector<8xf32>
    %21 = vector.shape_cast %20 : vector<8xf32> to vector<8x1xf32>
    %c0_15 = arith.constant 0 : index
    %c0_16 = arith.constant 0 : index
    %22 = memref.load %arg7[%c0_15, %c0_16] : memref<1x1xf32, #tpu.memory_space<smem>>
    %23 = vector.broadcast %22 : f32 to vector<8x1xf32>
    %24 = arith.addf %21, %23 : vector<8x1xf32>
    %c0_17 = arith.constant 0 : index
    %c0_18 = arith.constant 0 : index
    %25 = vector.load %arg8[%c0_17, %c0_18] : memref<8x1xf32, #tpu.memory_space<vmem>>, vector<8x1xf32>
    tpu.vector_store %arg8[%c0_17, %c0_18], %24 {strides = array<i32>} : memref<8x1xf32, #tpu.memory_space<vmem>>, vector<8x1xf32>,
    return
  }
  func.func @transform_0(%arg0: i32) -> (i32, i32) {
    %c0_i32 = arith.constant 0 : i32
    %c0_i32_0 = arith.constant 0 : i32
    return %arg0, %c0_i32 : i32, i32
  }
  func.func @transform_1(%arg0: i32) -> (i32, i32) {
    %c0_i32 = arith.constant 0 : i32
    %c0_i32_0 = arith.constant 0 : i32
    %c0_i32_1 = arith.constant 0 : i32
    return %c0_i32, %c0_i32_0 : i32, i32
  }
  func.func @transform_2(%arg0: i32) -> (i32, i32) {
    %c0_i32 = arith.constant 0 : i32
    %c0_i32_0 = arith.constant 0 : i32
    %c0_i32_1 = arith.constant 0 : i32
    return %c0_i32, %c0_i32_0 : i32, i32
  }
  func.func @transform_3(%arg0: i32) -> (i32, i32) {
    %c0_i32 = arith.constant 0 : i32
    %c0_i32_0 = arith.constant 0 : i32
    %c0_i32_1 = arith.constant 0 : i32
    return %c0_i32, %c0_i32_0 : i32, i32
  }
  func.func @transform_4(%arg0: i32) -> (i32, i32) {
    %c0_i32 = arith.constant 0 : i32
    %c0_i32_0 = arith.constant 0 : i32
    %c0_i32_1 = arith.constant 0 : i32
    return %c0_i32, %c0_i32_0 : i32, i32
  }
  func.func @transform_5(%arg0: i32) -> (i32, i32) {
    %c0_i32 = arith.constant 0 : i32
    %c0_i32_0 = arith.constant 0 : i32
    %c0_i32_1 = arith.constant 0 : i32
    return %c0_i32, %c0_i32_0 : i32, i32
  }
  func.func @transform_6(%arg0: i32) -> (i32, i32) {
    %c0_i32 = arith.constant 0 : i32
    %c0_i32_0 = arith.constant 0 : i32
    %c0_i32_1 = arith.constant 0 : i32
    return %c0_i32, %c0_i32_0 : i32, i32
  }
  func.func @transform_7(%arg0: i32) -> (i32, i32) {
    %c0_i32 = arith.constant 0 : i32
    %c0_i32_0 = arith.constant 0 : i32
    return %arg0, %c0_i32 : i32, i32
  }
}

</mosaic_0001>

<bundles_post_ra>
// kernel: tpu_custom_call.1
= control target key start
LH: loop header
LB: loop body
LE: loop exit
PB: predicated region body
PF: predicated region fallthrough
CT: control target
= control target key end

     0   :  { %13 = vsyncpa [#allocation4], 0  ;;  %s2688_s0 = inlined_call_operand.hbm [shape: f32[8,392], index: 0, kind: input, shape index: {}]   ;;  %s2689_s1 = inlined_call_operand.hbm [shape: bf16[392,512], index: 1, kind: input, shape index: {}]   ;;  %s2690_s2 = inlined_call_operand.vmem [shape: f32[1,512], index: 2, kind: input, shape index: {}]   ;;  %s2691_s3 = inlined_call_operand.hbm [shape: bf16[512,512], index: 3, kind: input, shape index: {}]   ;;  %s2692_s4 = inlined_call_operand.vmem [shape: f32[1,512], index: 4, kind: input, shape index: {}]   ;;  %s2693_s5 = inlined_call_operand.vmem [shape: f32[1,512], index: 5, kind: input, shape index: {}]   ;;  %s2694_s6 = inlined_call_operand.<no memory space> [shape: f32[1,1], index: 6, kind: input, shape index: {}]   ;;  %s2695_s7 = inlined_call_operand.vmem [shape: f32[8,1], index: 7, kind: output, shape index: {}]  }
   0x1   :  { %14 = vsyncpa [#allocation6], 0  ;;  %s2545_s24 = smov [#allocation5]   ;;  %s2475_s28 = scalar_lea.hbm %s2689_s1, 12544 }
   0x2   :  { %s30_s25 = sshll.u32 %s2545_s24, 4  ;;  %p2476_p0 = scmp.ne.s32.totalorder %s2689_s1, %s2475_s28  ;;  %s31_s25 = int_to_ptr.vmem [resolvable:$true] %s30_s25 }
   0x3   :  { %p2479_p1 = scmp.lt.u32.totalorder %s2475_s28, %s2689_s1 }
   0x5   :  { %p2481_p2 = pnand %p2479_p1, %p2476_p0 }
   0x7   :  { %2484 = shalt.err (!%p2481_p2)
}
   0x8   :  { %s2485_s10 = scalar_lea.vmem %s31_s25, 12544  ;;  %p2490_p4 = scmp.lt.s32.totalorder %s31_s25, %s31_s25 }
   0x9   :  { %p2486_p3 = scmp.ne.s32.totalorder %s31_s25, %s2485_s10  ;;  %p2491_p5 = scmp.lt.s32.totalorder %s2485_s10, %s2485_s10 }
   0xb   :  { %p2492_p6 = por %p2491_p5, %p2490_p4 }
   0xd   :  { %p2493_p7 = pnand %p2492_p6, %p2486_p3 }
   0xf   :  { %2496 = shalt.err (!%p2493_p7)
}
  0x10   :  { %s2546_s11 = smov 256   ;;  %s2547_s12 = smov 16  }
  0x11   :  { %36 = dma.hbm_to_vmem [thread:$0]  %s2689_s1, 12544, %s31_s25, [#allocation6], %s2546_s11, %s2546_s11, %s2547_s12  }
  0x12   :  { %s2548_s15 = smov [#allocation3]   ;;  %s2549_s17 = smov [#allocation7]  }
  0x13   :  { %s21_s16 = sshll.u32 %s2548_s15, 4  ;;  %s44_s18 = sshll.u32 %s2549_s17, 4  ;;  %s22_s16 = int_to_ptr.vmem [resolvable:$true] %s21_s16  ;;  %s45_s18 = int_to_ptr.vmem [resolvable:$true] %s44_s18 }
  0x14   :  { %s2497_s21 = scalar_lea.hbm %s2688_s0, 512 }
  0x15   :  { %p2498_p8 = scmp.ne.s32.totalorder %s2688_s0, %s2497_s21  ;;  %p2501_p9 = scmp.lt.u32.totalorder %s2497_s21, %s2688_s0 }
  0x17   :  { %p2503_p10 = pnand %p2501_p9, %p2498_p8 }
  0x19   :  { %2506 = shalt.err (!%p2503_p10)
}
  0x1a   :  { %s2507_s1 = scalar_lea.vmem %s22_s16, 512  ;;  %p2512_p12 = scmp.lt.s32.totalorder %s22_s16, %s22_s16 }
  0x1b   :  { %p2508_p11 = scmp.ne.s32.totalorder %s22_s16, %s2507_s1  ;;  %p2513_p13 = scmp.lt.s32.totalorder %s2507_s1, %s2507_s1 }
  0x1d   :  { %p2514_p0 = por %p2513_p13, %p2512_p12 }
  0x1f   :  { %p2515_p1 = pnand %p2514_p0, %p2508_p11 }
  0x21   :  { %2518 = shalt.err (!%p2515_p1)
}
  0x22   :  { %24 = dma.hbm_to_vmem [thread:$0]  %s2688_s0, 512, %s22_s16, [#allocation4]  }
  0x23   :  { %s2519_s30 = scalar_lea.hbm %s2691_s3, 16384 }
  0x24   :  { %p2520_p2 = scmp.ne.s32.totalorder %s2691_s3, %s2519_s30  ;;  %p2523_p3 = scmp.lt.u32.totalorder %s2519_s30, %s2691_s3 }
  0x26   :  { %p2525_p4 = pnand %p2523_p3, %p2520_p2 }
  0x28   :  { %2528 = shalt.err (!%p2525_p4)
}
  0x29   :  { %s2529_s14 = scalar_lea.vmem %s45_s18, 16384  ;;  %p2534_p6 = scmp.lt.s32.totalorder %s45_s18, %s45_s18 }
  0x2a   :  { %p2530_p5 = scmp.ne.s32.totalorder %s45_s18, %s2529_s14  ;;  %p2535_p7 = scmp.lt.s32.totalorder %s2529_s14, %s2529_s14 }
  0x2c   :  { %p2536_p8 = por %p2535_p7, %p2534_p6 }
  0x2e   :  { %p2537_p9 = pnand %p2536_p8, %p2530_p5 }
  0x30   :  { %2540 = shalt.err (!%p2537_p9)
}
  0x31   :  { %50 = dma.hbm_to_vmem [thread:$0]  %s2691_s3, 16384, %s45_s18, [#allocation6], %s2546_s11, %s2546_s11, %s2547_s12  }
  0x32   :  { %2541 = dma.done.wait [#allocation4], 512  }
  0x33   :  { %2542 = vsyncadd [#allocation4], 4294966784 }
  0x34   :  { %2543 = dma.done.wait [#allocation6], 28928  }
  0x35   :  { %2544 = vsyncadd [#allocation6], 4294938368  ;;  %v2135_v0 = vld [vmem:[#allocation5 + $0x4] ss:$16 sps:$4 sm:$0xff]   ;;  %v2137_v1 = vld [vmem:[#allocation5] ss:$16 sps:$4 sm:$0xff]  }
  0x36   :  { %702 = vmatprep.subr.bf16.mxu0 %v2135_v0  ;;  %v2138_v2 = vld [vmem:[#allocation5 + $0x24] ss:$16 sps:$4 sm:$0xff]   ;;  %v2140_v3 = vld [vmem:[#allocation5 + $0x20] ss:$16 sps:$4 sm:$0xff]   ;;  %v2156_v7 = vld [vmem:[#allocation5 + $0xc] ss:$16 sps:$4 sm:$0xff]  }
  0x37   :  { %703 = vmatpush1.bf16.msra.mxu0 %v2137_v1  ;;  %v2141_v4 = vld [vmem:[#allocation5 + $0x44] ss:$16 sps:$4 sm:$0xff]   ;;  %v2143_v5 = vld [vmem:[#allocation5 + $0x40] ss:$16 sps:$4 sm:$0xff]   ;;  %v2158_v8 = vld [vmem:[#allocation5 + $0x8] ss:$16 sps:$4 sm:$0xff]   ;;  %784 = vmatprep.subr.bf16.mxu1 %v2156_v7 }
  0x38   :  { %704 = vmatprep.subr.bf16.mxu0 %v2138_v2  ;;  %v2144_v6 = vld [vmem:[#allocation5 + $0x64] ss:$16 sps:$4 sm:$0xff]   ;;  %v2146_v9 = vld [vmem:[#allocation5 + $0x60] ss:$16 sps:$4 sm:$0xff]   ;;  %v2162_v11 = vld [vmem:[#allocation5 + $0x2c] ss:$16 sps:$4 sm:$0xff]   ;;  %785 = vmatpush1.bf16.msra.mxu1 %v2158_v8 }
  0x39   :  { %v2147_v10 = vld [vmem:[#allocation5 + $0x84] ss:$16 sps:$4 sm:$0xff]   ;;  %v2164_v12 = vld [vmem:[#allocation5 + $0x28] ss:$16 sps:$4 sm:$0xff]   ;;  %786 = vmatprep.subr.bf16.mxu1 %v2162_v11  ;;  %v2149_v13 = vld [vmem:[#allocation5 + $0x80] ss:$16 sps:$4 sm:$0xff]  }
  0x3a   :  { %v2168_v14 = vld [vmem:[#allocation5 + $0x4c] ss:$16 sps:$4 sm:$0xff]   ;;  %v2150_v15 = vld [vmem:[#allocation5 + $0xa4] ss:$16 sps:$4 sm:$0xff]   ;;  %v2170_v16 = vld [vmem:[#allocation5 + $0x48] ss:$16 sps:$4 sm:$0xff]  }
  0x3b   :  { %705 = vmatpush1.bf16.msra.mxu0 %v2140_v3  ;;  %v2174_v17 = vld [vmem:[#allocation5 + $0x6c] ss:$16 sps:$4 sm:$0xff]   ;;  %v2152_v18 = vld [vmem:[#allocation5 + $0xa0] ss:$16 sps:$4 sm:$0xff]   ;;  %v2153_v19 = vld [vmem:[#allocation5 + $0xc4] ss:$16 sps:$4 sm:$0xff]  }
  0x3c   :  { %706 = vmatprep.subr.bf16.mxu0 %v2141_v4  ;;  %787 = vmatpush1.bf16.msra.mxu1 %v2164_v12  ;;  %v2176_v20 = vld [vmem:[#allocation5 + $0x68] ss:$16 sps:$4 sm:$0xff]   ;;  %v2180_v21 = vld [vmem:[#allocation5 + $0x8c] ss:$16 sps:$4 sm:$0xff]   ;;  %v2155_v22 = vld [vmem:[#allocation5 + $0xc0] ss:$16 sps:$4 sm:$0xff]  }
  0x3d   :  { %788 = vmatprep.subr.bf16.mxu1 %v2168_v14  ;;  %v2159_v23 = vld [vmem:[#allocation5 + $0xe4] ss:$16 sps:$4 sm:$0xff]   ;;  %v2182_v24 = vld [vmem:[#allocation5 + $0x88] ss:$16 sps:$4 sm:$0xff]   ;;  %v2186_v25 = vld [vmem:[#allocation5 + $0xac] ss:$16 sps:$4 sm:$0xff]  }
  0x3e   :  { %v2161_v26 = vld [vmem:[#allocation5 + $0xe0] ss:$16 sps:$4 sm:$0xff]   ;;  %v2165_v27 = vld [vmem:[#allocation5 + $0x104] ss:$16 sps:$4 sm:$0xff]   ;;  %v2188_v28 = vld [vmem:[#allocation5 + $0xa8] ss:$16 sps:$4 sm:$0xff]  }
  0x3f   :  { %707 = vmatpush1.bf16.msra.mxu0 %v2143_v5  ;;  %v2192_v29 = vld [vmem:[#allocation5 + $0xcc] ss:$16 sps:$4 sm:$0xff]   ;;  %v2167_v30 = vld [vmem:[#allocation5 + $0x100] ss:$16 sps:$4 sm:$0xff]   ;;  %v2171_v31 = vld [vmem:[#allocation5 + $0x124] ss:$16 sps:$4 sm:$0xff]  }
  0x40   :  { %708 = vmatprep.subr.bf16.mxu0 %v2144_v6  ;;  %789 = vmatpush1.bf16.msra.mxu1 %v2170_v16  ;;  %v2194_v32 = vld [vmem:[#allocation5 + $0xc8] ss:$16 sps:$4 sm:$0xff]   ;;  %v2198_v33 = vld [vmem:[#allocation5 + $0xec] ss:$16 sps:$4 sm:$0xff]   ;;  %v2173_v35 = vld [vmem:[#allocation5 + $0x120] ss:$16 sps:$4 sm:$0xff]  }
  0x41   :  { %790 = vmatprep.subr.bf16.mxu1 %v2174_v17  ;;  %v68_v34 = vld [vmem:[#allocation3 + $0x8] sm:$0xff]  ;;  %v2177_v37 = vld [vmem:[#allocation5 + $0x144] ss:$16 sps:$4 sm:$0xff]   ;;  %v2179_v40 = vld [vmem:[#allocation5 + $0x140] ss:$16 sps:$4 sm:$0xff]   ;;  %vm685_vm0 = vcmask 64512  }
  0x42   :  { %v72_v36 = vpack.c.bf16 %v68_v34, %v68_v34  ;;  %v2200_v38 = vld [vmem:[#allocation5 + $0xe8] ss:$16 sps:$4 sm:$0xff]   ;;  %v2204_v39 = vld [vmem:[#allocation5 + $0x10c] ss:$16 sps:$4 sm:$0xff]   ;;  %v2183_v41 = vld [vmem:[#allocation5 + $0x164] ss:$16 sps:$4 sm:$0xff]  }
  0x43   :  { %709 = vmatpush1.bf16.msra.mxu0 %v2146_v9  ;;  %v2206_v42 = vld [vmem:[#allocation5 + $0x108] ss:$16 sps:$4 sm:$0xff]   ;;  %v2210_v43 = vld [vmem:[#allocation5 + $0x12c] ss:$16 sps:$4 sm:$0xff]   ;;  %v2185_v44 = vld [vmem:[#allocation5 + $0x160] ss:$16 sps:$4 sm:$0xff]  }
  0x44   :  { %710 = vmatprep.subr.bf16.mxu0 %v2147_v10  ;;  %791 = vmatpush1.bf16.msra.mxu1 %v2176_v20  ;;  %v2189_v45 = vld [vmem:[#allocation5 + $0x184] ss:$16 sps:$4 sm:$0xff]   ;;  %v2212_v46 = vld [vmem:[#allocation5 + $0x128] ss:$16 sps:$4 sm:$0xff]   ;;  %v2216_v47 = vld [vmem:[#allocation5 + $0x14c] ss:$16 sps:$4 sm:$0xff]  }
  0x45   :  { %792 = vmatprep.subr.bf16.mxu1 %v2180_v21  ;;  %734 = vmatprep.mubr.bf16.mxu0 %v72_v36  ;;  %v2191_v48 = vld [vmem:[#allocation5 + $0x180] ss:$16 sps:$4 sm:$0xff]   ;;  %v2195_v49 = vld [vmem:[#allocation5 + $0x1a4] ss:$16 sps:$4 sm:$0xff]   ;;  %v2218_v50 = vld [vmem:[#allocation5 + $0x148] ss:$16 sps:$4 sm:$0xff]  }
  0x46   :  { %816 = vmatprep.mubr.bf16.mxu1 %v72_v36  ;;  %v2222_v51 = vld [vmem:[#allocation5 + $0x16c] ss:$16 sps:$4 sm:$0xff]   ;;  %v2197_v52 = vld [vmem:[#allocation5 + $0x1a0] ss:$16 sps:$4 sm:$0xff]   ;;  %v2201_v53 = vld [vmem:[#allocation5 + $0x1c4] ss:$16 sps:$4 sm:$0xff]  }
  0x47   :  { %711 = vmatpush1.bf16.msra.mxu0 %v2149_v13  ;;  %v2224_v54 = vld [vmem:[#allocation5 + $0x168] ss:$16 sps:$4 sm:$0xff]   ;;  %v2228_v55 = vld [vmem:[#allocation5 + $0x18c] ss:$16 sps:$4 sm:$0xff]   ;;  %v2203_v56 = vld [vmem:[#allocation5 + $0x1c0] ss:$16 sps:$4 sm:$0xff]  }
  0x48   :  { %712 = vmatprep.subr.bf16.mxu0 %v2150_v15  ;;  %793 = vmatpush1.bf16.msra.mxu1 %v2182_v24  ;;  %v2207_v57 = vld [vmem:[#allocation5 + $0x1e4] ss:$16 sps:$4 sm:$0xff]   ;;  %v2230_v58 = vld [vmem:[#allocation5 + $0x188] ss:$16 sps:$4 sm:$0xff]   ;;  %v2209_v59 = vld [vmem:[#allocation5 + $0x1e0] ss:$16 sps:$4 sm:$0xff]  }
  0x49   :  { %794 = vmatprep.subr.bf16.mxu1 %v2186_v25  ;;  %v2215_v60 = vld [vmem:[#allocation5 + $0x204] ss:$16 sps:$4 sm:$0xff]   ;;  %v2234_v61 = vld [vmem:[#allocation5 + $0x1ac] ss:$16 sps:$4 sm:$0xff]   ;;  %v2236_v0 = vld [vmem:[#allocation5 + $0x1a8] ss:$16 sps:$4 sm:$0xff]  }
  0x4a   :  { %v67_v62 = vld [vmem:[#allocation3] sm:$0xff]  ;;  %v70_v63 = vld [vmem:[#allocation3 + $0x18] sm:$0xff]  ;;  %vm689_vm1 = vcmask 1043456   ;;  %vm1866_vm2 = vcmask 7168  }
  0x4b   :  { %713 = vmatpush1.bf16.msra.mxu0 %v2152_v18  ;;  %v71_v1 = vpack.c.bf16 %v67_v62, %v67_v62  ;;  %v2240_v2 = vld [vmem:[#allocation5 + $0x1cc] ss:$16 sps:$4 sm:$0xff]   ;;  %v2213_v3 = vld [vmem:[#allocation5 + $0x200] ss:$16 sps:$4 sm:$0xff]   ;;  %v74_v4 = vpack.c.bf16 %v70_v63, %v70_v63  ;;  %v2221_v5 = vld [vmem:[#allocation5 + $0x224] ss:$16 sps:$4 sm:$0xff]  }
  0x4c   :  { %714 = vmatprep.subr.bf16.mxu0 %v2153_v19  ;;  %795 = vmatpush1.bf16.msra.mxu1 %v2188_v28  ;;  %v2242_v6 = vld [vmem:[#allocation5 + $0x1c8] ss:$16 sps:$4 sm:$0xff]   ;;  %v2246_v7 = vld [vmem:[#allocation5 + $0x1ec] ss:$16 sps:$4 sm:$0xff]   ;;  %v2219_v8 = vld [vmem:[#allocation5 + $0x220] ss:$16 sps:$4 sm:$0xff]  }
  0x4d   :  { %796 = vmatprep.subr.bf16.mxu1 %v2192_v29  ;;  %v2227_v9 = vld [vmem:[#allocation5 + $0x244] ss:$16 sps:$4 sm:$0xff]   ;;  %v2248_v10 = vld [vmem:[#allocation5 + $0x1e8] ss:$16 sps:$4 sm:$0xff]   ;;  %v2254_v11 = vld [vmem:[#allocation5 + $0x20c] ss:$16 sps:$4 sm:$0xff]  }
  0x4e   :  { %v2225_v12 = vld [vmem:[#allocation5 + $0x240] ss:$16 sps:$4 sm:$0xff]   ;;  %v2233_v13 = vld [vmem:[#allocation5 + $0x264] ss:$16 sps:$4 sm:$0xff]   ;;  %v2252_v14 = vld [vmem:[#allocation5 + $0x208] ss:$16 sps:$4 sm:$0xff]  }
  0x4f   :  { %715 = vmatpush1.bf16.msra.mxu0 %v2155_v22  ;;  %v2260_v15 = vld [vmem:[#allocation5 + $0x22c] ss:$16 sps:$4 sm:$0xff]   ;;  %v2231_v16 = vld [vmem:[#allocation5 + $0x260] ss:$16 sps:$4 sm:$0xff]   ;;  %v2239_v17 = vld [vmem:[#allocation5 + $0x284] ss:$16 sps:$4 sm:$0xff]  }
  0x50   :  { %716 = vmatprep.subr.bf16.mxu0 %v2159_v23  ;;  %797 = vmatpush1.bf16.msra.mxu1 %v2194_v32  ;;  %v2258_v18 = vld [vmem:[#allocation5 + $0x228] ss:$16 sps:$4 sm:$0xff]   ;;  %v2265_v19 = vld [vmem:[#allocation5 + $0x24c] ss:$16 sps:$4 sm:$0xff]   ;;  %v2237_v20 = vld [vmem:[#allocation5 + $0x280] ss:$16 sps:$4 sm:$0xff]  }
  0x51   :  { %798 = vmatprep.subr.bf16.mxu1 %v2198_v33  ;;  %v2245_v21 = vld [vmem:[#allocation5 + $0x2a4] ss:$16 sps:$4 sm:$0xff]   ;;  %v2263_v22 = vld [vmem:[#allocation5 + $0x248] ss:$16 sps:$4 sm:$0xff]   ;;  %v2268_v23 = vld [vmem:[#allocation5 + $0x26c] ss:$16 sps:$4 sm:$0xff]  }
  0x52   :  { %v2243_v24 = vld [vmem:[#allocation5 + $0x2a0] ss:$16 sps:$4 sm:$0xff]   ;;  %v2251_v25 = vld [vmem:[#allocation5 + $0x2c4] ss:$16 sps:$4 sm:$0xff]   ;;  %v2274_v32 = vld [vmem:[#allocation5 + $0x2ac] ss:$16 sps:$4 sm:$0xff]  }
  0x53   :  { %717 = vmatpush1.bf16.msra.mxu0 %v2161_v26  ;;  %v2266_v26 = vld [vmem:[#allocation5 + $0x268] ss:$16 sps:$4 sm:$0xff]   ;;  %v2249_v28 = vld [vmem:[#allocation5 + $0x2c0] ss:$16 sps:$4 sm:$0xff]   ;;  %v2257_v29 = vld [vmem:[#allocation5 + $0x2e4] ss:$16 sps:$4 sm:$0xff]  }
  0x54   :  { %718 = vmatprep.subr.bf16.mxu0 %v2165_v27  ;;  %799 = vmatpush1.bf16.msra.mxu1 %v2200_v38  ;;  %v2271_v27 = vld [vmem:[#allocation5 + $0x28c] ss:$16 sps:$4 sm:$0xff]   ;;  %v2255_v33 = vld [vmem:[#allocation5 + $0x2e0] ss:$16 sps:$4 sm:$0xff]   ;;  %v2272_v36 = vld [vmem:[#allocation5 + $0x2a8] ss:$16 sps:$4 sm:$0xff]  }
  0x55   :  { %800 = vmatprep.subr.bf16.mxu1 %v2204_v39  ;;  %v69_v38 = vld [vmem:[#allocation3 + $0x10] sm:$0xff] }
  0x56   :  { %v2307_v62 = vld [vmem:[#allocation7 + $0x80] ss:$16 sps:$4 sm:$0xff]   ;;  %v2315_v63 = vld [vmem:[#allocation7 + $0xa4] ss:$16 sps:$4 sm:$0xff]  }
  0x57   :  { %719 = vmatpush1.bf16.msra.mxu0 %v2167_v30  ;;  %v171_v30 = vld [vmem:[#allocation5 + $0x300] sm:$0xff] }
  0x58   :  { %720 = vmatprep.subr.bf16.mxu0 %v2171_v31  ;;  %801 = vmatpush1.bf16.msra.mxu1 %v2206_v42  ;;  %v2269_v31 = vld [vmem:[#allocation5 + $0x288] ss:$16 sps:$4 sm:$0xff]   ;;  %v1971_v34 = vcombine.high %v171_v30, %v171_v30  ;;  %v2280_v42 = vld [vmem:[#allocation5 + $0x2ec] ss:$16 sps:$4 sm:$0xff]  }
  0x59   :  { %802 = vmatprep.subr.bf16.mxu1 %v2210_v43  ;;  %v73_v43 = vpack.c.bf16 %v69_v38, %v69_v38  ;;  %v2366_v38 = vld [vmem:[#allocation7 + $0x1ac] ss:$16 sps:$4 sm:$0xff]  }
  0x5b   :  { %721 = vmatpush1.bf16.msra.mxu0 %v2173_v35  ;;  %v1970_v35 = vcombine.low %v171_v30, %v171_v30  ;;  %v2355_v30 = vld [vmem:[#allocation7 + $0x180] ss:$16 sps:$4 sm:$0xff]  }
  0x5c   :  { %722 = vmatprep.subr.bf16.mxu0 %v2177_v37  ;;  %803 = vmatpush1.bf16.msra.mxu1 %v2212_v46  ;;  %v2277_v37 = vld [vmem:[#allocation5 + $0x2cc] ss:$16 sps:$4 sm:$0xff]   ;;  %v2291_v46 = vld [vmem:[#allocation7 + $0x24] ss:$16 sps:$4 sm:$0xff]  }
  0x5d   :  { %804 = vmatprep.subr.bf16.mxu1 %v2216_v47  ;;  %v691_v39 = vsel %vm689_vm1, %v1970_v35, 0  ;;  %v2278_v47 = vld [vmem:[#allocation5 + $0x2e8] ss:$16 sps:$4 sm:$0xff]  }
  0x5e   :  { %v2352_v35 = vld [vmem:[#allocation7 + $0x168] ss:$16 sps:$4 sm:$0xff]  }
  0x5f   :  { %723 = vmatpush1.bf16.msra.mxu0 %v2179_v40  ;;  %v2285_v40 = vld [vmem:[#allocation7 + $0x4] ss:$16 sps:$4 sm:$0xff]  }
  0x60   :  { %724 = vmatprep.subr.bf16.mxu0 %v2183_v41  ;;  %805 = vmatpush1.bf16.msra.mxu1 %v2218_v50  ;;  %v2275_v41 = vld [vmem:[#allocation5 + $0x2c8] ss:$16 sps:$4 sm:$0xff]   ;;  %v2289_v50 = vld [vmem:[#allocation7 + $0x20] ss:$16 sps:$4 sm:$0xff]  }
  0x61   :  { %806 = vmatprep.subr.bf16.mxu1 %v2222_v51  ;;  %v2297_v51 = vld [vmem:[#allocation7 + $0x44] ss:$16 sps:$4 sm:$0xff]  }
  0x63   :  { %725 = vmatpush1.bf16.msra.mxu0 %v2185_v44  ;;  %v172_v44 = vld [vmem:[#allocation5 + $0x308] sm:$0xff] }
  0x64   :  { %726 = vmatprep.subr.bf16.mxu0 %v2189_v45  ;;  %807 = vmatpush1.bf16.msra.mxu1 %v2224_v54  ;;  %v2283_v45 = vld [vmem:[#allocation7] ss:$16 sps:$4 sm:$0xff]  }
  0x65   :  { %808 = vmatprep.subr.bf16.mxu1 %v2228_v55  ;;  %v2303_v55 = vld [vmem:[#allocation7 + $0x64] ss:$16 sps:$4 sm:$0xff]  }
  0x67   :  { %727 = vmatpush1.bf16.msra.mxu0 %v2191_v48  ;;  %v1973_v48 = vcombine.high %v172_v44, %v172_v44 }
  0x68   :  { %728 = vmatprep.subr.bf16.mxu0 %v2195_v49  ;;  %809 = vmatpush1.bf16.msra.mxu1 %v2230_v58  ;;  %v1972_v49 = vcombine.low %v172_v44, %v172_v44  ;;  %v2301_v58 = vld [vmem:[#allocation7 + $0x60] ss:$16 sps:$4 sm:$0xff]   ;;  %v2375_v44 = vld [vmem:[#allocation7 + $0x1e4] ss:$16 sps:$4 sm:$0xff]  }
  0x69   :  { %810 = vmatprep.subr.bf16.mxu1 %v2234_v61  ;;  %v2300_v61 = vld [vmem:[#allocation7 + $0x4c] ss:$16 sps:$4 sm:$0xff]  }
  0x6a   :  { %v697_v54 = vsel %vm689_vm1, %v1972_v49, 0  ;;  %v2384_v49 = vld [vmem:[#allocation7 + $0x20c] ss:$16 sps:$4 sm:$0xff]  }
  0x6b   :  { %729 = vmatpush1.bf16.msra.mxu0 %v2197_v52  ;;  %v2288_v52 = vld [vmem:[#allocation7 + $0xc] ss:$16 sps:$4 sm:$0xff]  }
  0x6c   :  { %730 = vmatprep.subr.bf16.mxu0 %v2201_v53  ;;  %811 = vmatpush1.bf16.msra.mxu1 %v2236_v0  ;;  %v2295_v53 = vld [vmem:[#allocation7 + $0x40] ss:$16 sps:$4 sm:$0xff]   ;;  %v2298_v0 = vld [vmem:[#allocation7 + $0x48] ss:$16 sps:$4 sm:$0xff]  }
  0x6d   :  { %812 = vmatprep.subr.bf16.mxu1 %v2240_v2  ;;  %v2313_v2 = vld [vmem:[#allocation7 + $0xa0] ss:$16 sps:$4 sm:$0xff]  }
  0x6f   :  { %731 = vmatpush1.bf16.msra.mxu0 %v2203_v56  ;;  %v2286_v56 = vld [vmem:[#allocation7 + $0x8] ss:$16 sps:$4 sm:$0xff]  }
  0x70   :  { %732 = vmatprep.subr.bf16.mxu0 %v2207_v57  ;;  %813 = vmatpush1.bf16.msra.mxu1 %v2242_v6  ;;  %v2294_v57 = vld [vmem:[#allocation7 + $0x2c] ss:$16 sps:$4 sm:$0xff]   ;;  %v2319_v6 = vld [vmem:[#allocation7 + $0xc0] ss:$16 sps:$4 sm:$0xff]  }
  0x71   :  { %814 = vmatprep.subr.bf16.mxu1 %v2246_v7  ;;  %v2327_v7 = vld [vmem:[#allocation7 + $0xe4] ss:$16 sps:$4 sm:$0xff]  }
  0x73   :  { %733 = vmatpush1.bf16.msra.mxu0 %v2209_v59  ;;  %v2309_v59 = vld [vmem:[#allocation7 + $0x84] ss:$16 sps:$4 sm:$0xff]  }
  0x74   :  { %743 = vmatprep.subr.bf16.mxu0 %v2215_v60  ;;  %815 = vmatpush1.bf16.msra.mxu1 %v2248_v10  ;;  %v2292_v60 = vld [vmem:[#allocation7 + $0x28] ss:$16 sps:$4 sm:$0xff]   ;;  %v2325_v10 = vld [vmem:[#allocation7 + $0xe0] ss:$16 sps:$4 sm:$0xff]  }
  0x75   :  { %825 = vmatprep.subr.bf16.mxu1 %v2254_v11  ;;  %v2333_v11 = vld [vmem:[#allocation7 + $0x104] ss:$16 sps:$4 sm:$0xff]  }
  0x76   :  { %735 = vmatmul.mubr.bf16.vlgmr.msra.gmra.mrb[0].mxu0 %v71_v1 }
  0x77   :  { %744 = vmatpush1.bf16.msra.mxu0 %v2213_v3  ;;  %1975 = vmatprep.mubr.msk.bf16.mxu0 %vm685_vm0, %v74_v4  ;;  %v2321_v3 = vld [vmem:[#allocation7 + $0xc4] ss:$16 sps:$4 sm:$0xff]  }
  0x78   :  { %745 = vmatprep.subr.bf16.mxu0 %v2221_v5  ;;  %817 = vmatmul.mubr.bf16.vlgmr.msra.gmra.mrb[0].mxu1 %v71_v1  ;;  %v2306_v1 = vld [vmem:[#allocation7 + $0x6c] ss:$16 sps:$4 sm:$0xff]  }
  0x79   :  { %826 = vmatpush1.bf16.msra.mxu1 %v2252_v14  ;;  %1977 = vmatprep.mubr.msk.bf16.mxu1 %vm685_vm0, %v74_v4  ;;  %v2304_v4 = vld [vmem:[#allocation7 + $0x68] ss:$16 sps:$4 sm:$0xff]   ;;  %v2312_v5 = vld [vmem:[#allocation7 + $0x8c] ss:$16 sps:$4 sm:$0xff]   ;;  %v2331_v14 = vld [vmem:[#allocation7 + $0x100] ss:$16 sps:$4 sm:$0xff]  }
  0x7a   :  { %827 = vmatprep.subr.bf16.mxu1 %v2260_v15  ;;  %v2339_v15 = vld [vmem:[#allocation7 + $0x124] ss:$16 sps:$4 sm:$0xff]  }
  0x7b   :  { %746 = vmatpush1.bf16.msra.mxu0 %v2219_v8  ;;  %v2310_v8 = vld [vmem:[#allocation7 + $0x88] ss:$16 sps:$4 sm:$0xff]  }
  0x7c   :  { %747 = vmatprep.subr.bf16.mxu0 %v2227_v9  ;;  %v2318_v9 = vld [vmem:[#allocation7 + $0xac] ss:$16 sps:$4 sm:$0xff]  }
  0x7d   :  { %828 = vmatpush1.bf16.msra.mxu1 %v2258_v18  ;;  %v2337_v18 = vld [vmem:[#allocation7 + $0x120] ss:$16 sps:$4 sm:$0xff]  }
  0x7e   :  { %829 = vmatprep.subr.bf16.mxu1 %v2265_v19  ;;  %v2345_v19 = vld [vmem:[#allocation7 + $0x144] ss:$16 sps:$4 sm:$0xff]  }
  0x7f   :  { %748 = vmatpush1.bf16.msra.mxu0 %v2225_v12  ;;  %v2316_v12 = vld [vmem:[#allocation7 + $0xa8] ss:$16 sps:$4 sm:$0xff]  }
  0x80   :  { %749 = vmatprep.subr.bf16.mxu0 %v2233_v13  ;;  %v2324_v13 = vld [vmem:[#allocation7 + $0xcc] ss:$16 sps:$4 sm:$0xff]  }
  0x81   :  { %830 = vmatpush1.bf16.msra.mxu1 %v2263_v22  ;;  %v2343_v22 = vld [vmem:[#allocation7 + $0x140] ss:$16 sps:$4 sm:$0xff]  }
  0x82   :  { %831 = vmatprep.subr.bf16.mxu1 %v2268_v23  ;;  %v2351_v23 = vld [vmem:[#allocation7 + $0x164] ss:$16 sps:$4 sm:$0xff]  }
  0x83   :  { %750 = vmatpush1.bf16.msra.mxu0 %v2231_v16  ;;  %v2322_v16 = vld [vmem:[#allocation7 + $0xc8] ss:$16 sps:$4 sm:$0xff]  }
  0x84   :  { %751 = vmatprep.subr.bf16.mxu0 %v2239_v17  ;;  %v2330_v17 = vld [vmem:[#allocation7 + $0xec] ss:$16 sps:$4 sm:$0xff]  }
  0x85   :  { %832 = vmatpush1.bf16.msra.mxu1 %v2266_v26  ;;  %v2349_v26 = vld [vmem:[#allocation7 + $0x160] ss:$16 sps:$4 sm:$0xff]  }
  0x86   :  { %833 = vmatprep.subr.bf16.mxu1 %v2271_v27  ;;  %v2357_v27 = vld [vmem:[#allocation7 + $0x184] ss:$16 sps:$4 sm:$0xff]  }
  0x87   :  { %752 = vmatpush1.bf16.msra.mxu0 %v2237_v20  ;;  %v2328_v20 = vld [vmem:[#allocation7 + $0xe8] ss:$16 sps:$4 sm:$0xff]  }
  0x88   :  { %753 = vmatprep.subr.bf16.mxu0 %v2245_v21  ;;  %v2336_v21 = vld [vmem:[#allocation7 + $0x10c] ss:$16 sps:$4 sm:$0xff]  }
  0x89   :  { %834 = vmatpush1.bf16.msra.mxu1 %v2269_v31  ;;  %v2363_v31 = vld [vmem:[#allocation7 + $0x1a4] ss:$16 sps:$4 sm:$0xff]  }
  0x8a   :  { %835 = vmatprep.subr.bf16.mxu1 %v2274_v32  ;;  %v2346_v32 = vld [vmem:[#allocation7 + $0x148] ss:$16 sps:$4 sm:$0xff]  }
  0x8b   :  { %754 = vmatpush1.bf16.msra.mxu0 %v2243_v24  ;;  %v2334_v24 = vld [vmem:[#allocation7 + $0x108] ss:$16 sps:$4 sm:$0xff]  }
  0x8c   :  { %755 = vmatprep.subr.bf16.mxu0 %v2251_v25  ;;  %v2342_v25 = vld [vmem:[#allocation7 + $0x12c] ss:$16 sps:$4 sm:$0xff]  }
  0x8d   :  { %836 = vmatpush1.bf16.msra.mxu1 %v2272_v36  ;;  %v2360_v36 = vld [vmem:[#allocation7 + $0x18c] ss:$16 sps:$4 sm:$0xff]  }
  0x8e   :  { %837 = vmatprep.subr.bf16.mxu1 %v2277_v37  ;;  %v2358_v37 = vld [vmem:[#allocation7 + $0x188] ss:$16 sps:$4 sm:$0xff]  }
  0x8f   :  { %756 = vmatpush1.bf16.msra.mxu0 %v2249_v28  ;;  %v2340_v28 = vld [vmem:[#allocation7 + $0x128] ss:$16 sps:$4 sm:$0xff]  }
  0x90   :  { %757 = vmatprep.subr.bf16.mxu0 %v2257_v29  ;;  %v2348_v29 = vld [vmem:[#allocation7 + $0x14c] ss:$16 sps:$4 sm:$0xff]  }
  0x91   :  { %838 = vmatpush1.bf16.msra.mxu1 %v2275_v41  ;;  %v2372_v41 = vld [vmem:[#allocation7 + $0x1cc] ss:$16 sps:$4 sm:$0xff]  }
  0x92   :  { %839 = vmatprep.subr.bf16.mxu1 %v2280_v42  ;;  %v2367_v42 = vld [vmem:[#allocation7 + $0x1c0] ss:$16 sps:$4 sm:$0xff]  }
  0x93   :  { %758 = vmatpush1.bf16.msra.mxu0 %v2255_v33  ;;  %v2354_v33 = vld [vmem:[#allocation7 + $0x16c] ss:$16 sps:$4 sm:$0xff]  }
  0x94   :  { %1974 = vmatprep.subr.msk.bf16.mxu0 %vm689_vm1, %v1971_v34  ;;  %v2361_v34 = vld [vmem:[#allocation7 + $0x1a0] ss:$16 sps:$4 sm:$0xff]  }
  0x95   :  { %840 = vmatpush1.bf16.msra.mxu1 %v2278_v47  ;;  %v2376_v47 = vld [vmem:[#allocation7 + $0x1e8] ss:$16 sps:$4 sm:$0xff]  }
  0x96   :  { %1976 = vmatprep.subr.msk.bf16.mxu1 %vm689_vm1, %v1973_v48  ;;  %v2381_v48 = vld [vmem:[#allocation7 + $0x204] ss:$16 sps:$4 sm:$0xff]  }
  0x97   :  { %760 = vmatpush1.bf16.msra.mxu0 %v691_v39  ;;  %v2364_v39 = vld [vmem:[#allocation7 + $0x1a8] ss:$16 sps:$4 sm:$0xff]  }
  0x98   :  { %1664 = vmatprep.subr.bf16.mxu0 %v2285_v40  ;;  %v2369_v40 = vld [vmem:[#allocation7 + $0x1c4] ss:$16 sps:$4 sm:$0xff]  }
  0x99   :  { %842 = vmatpush1.bf16.msra.mxu1 %v697_v54 }
  0x9a   :  { %776 = vmatmul.mubr.bf16.vlgmr.msra.gmra.mrb[0].mxu0 %v73_v43  ;;  %1746 = vmatprep.subr.bf16.mxu1 %v2288_v52 }
  0x9b   :  { %1665 = vmatpush1.bf16.msra.mxu0 %v2283_v45  ;;  %v2378_v45 = vld [vmem:[#allocation7 + $0x1ec] ss:$16 sps:$4 sm:$0xff]  }
  0x9c   :  { %1666 = vmatprep.subr.bf16.mxu0 %v2291_v46  ;;  %858 = vmatmul.mubr.bf16.vlgmr.msra.gmra.mrb[0].mxu1 %v73_v43  ;;  %v2370_v43 = vld [vmem:[#allocation7 + $0x1c8] ss:$16 sps:$4 sm:$0xff]   ;;  %v2373_v46 = vld [vmem:[#allocation7 + $0x1e0] ss:$16 sps:$4 sm:$0xff]  }
  0x9d   :  { %1747 = vmatpush1.bf16.msra.mxu1 %v2286_v56 }
  0x9e   :  { %1748 = vmatprep.subr.bf16.mxu1 %v2294_v57 }
  0x9f   :  { %1667 = vmatpush1.bf16.msra.mxu0 %v2289_v50  ;;  %v175_v50 = vlaneseq }
  0xa0   :  { %1668 = vmatprep.subr.bf16.mxu0 %v2297_v51 }
  0xa1   :  { %1749 = vmatpush1.bf16.msra.mxu1 %v2292_v60  ;;  %v2638_v51 = vshrl.u32 %v175_v50, 7  ;;  %v2441_v50 = vld [vmem:[#allocation7 + $0x344] ss:$16 sps:$4 sm:$0xff]  }
  0xa2   :  { %1750 = vmatprep.subr.bf16.mxu1 %v2300_v61 }
  0xa3   :  { %1669 = vmatpush1.bf16.msra.mxu0 %v2295_v53  ;;  %v2641_v52 = vsub.s32 0, %v2638_v51  ;;  %v2646_v53 = vld [vmem:[%s2690_s2] sm:$0xf]  ;;  %v2649_v54 = vsub.s32 1, %v2638_v51 }
  0xa4   :  { %1670 = vmatprep.subr.bf16.mxu0 %v2303_v55 }
  0xa5   :  { %1751 = vmatpush1.bf16.msra.mxu1 %v2298_v0  ;;  %v178_v55 = vrot.slane %v2646_v53, %v2641_v52  ;;  %v182_v56 = vrot.slane %v2646_v53, %v2649_v54 }
  0xa6   :  { %1752 = vmatprep.subr.bf16.mxu1 %v2306_v1  ;;  %v2656_v1 = vsub.s32 3, %v2638_v51 }
  0xa7   :  { %1671 = vmatpush1.bf16.msra.mxu0 %v2301_v58 }
  0xa8   :  { %1672 = vmatprep.subr.bf16.mxu0 %v2309_v59 }
  0xa9   :  { %1753 = vmatpush1.bf16.msra.mxu1 %v2304_v4  ;;  %v2382_v4 = vld [vmem:[#allocation7 + $0x208] ss:$16 sps:$4 sm:$0xff]  }
  0xaa   :  { %1754 = vmatprep.subr.bf16.mxu1 %v2312_v5 }
  0xab   :  { %1673 = vmatpush1.bf16.msra.mxu0 %v2307_v62 }
  0xac   :  { %1674 = vmatprep.subr.bf16.mxu0 %v2315_v63 }
  0xad   :  { %1755 = vmatpush1.bf16.msra.mxu1 %v2310_v8  ;;  %v190_v8 = vrot.slane %v2646_v53, %v2656_v1 }
  0xae   :  { %1756 = vmatprep.subr.bf16.mxu1 %v2318_v9  ;;  %v2385_v9 = vld [vmem:[#allocation7 + $0x220] ss:$16 sps:$4 sm:$0xff]  }
  0xaf   :  { %1675 = vmatpush1.bf16.msra.mxu0 %v2313_v2 }
  0xb0   :  { %1676 = vmatprep.subr.bf16.mxu0 %v2321_v3  ;;  %v2379_v3 = vld [vmem:[#allocation7 + $0x200] ss:$16 sps:$4 sm:$0xff]  }
  0xb1   :  { %1757 = vmatpush1.bf16.msra.mxu1 %v2316_v12  ;;  %v2393_v12 = vld [vmem:[#allocation7 + $0x244] ss:$16 sps:$4 sm:$0xff]  }
  0xb2   :  { %1758 = vmatprep.subr.bf16.mxu1 %v2324_v13  ;;  %v2396_v13 = vld [vmem:[#allocation7 + $0x24c] ss:$16 sps:$4 sm:$0xff]  }
  0xb3   :  { %1677 = vmatpush1.bf16.msra.mxu0 %v2319_v6  ;;  %v2387_v6 = vld [vmem:[#allocation7 + $0x224] ss:$16 sps:$4 sm:$0xff]  }
  0xb4   :  { %1678 = vmatprep.subr.bf16.mxu0 %v2327_v7  ;;  %v2390_v7 = vld [vmem:[#allocation7 + $0x22c] ss:$16 sps:$4 sm:$0xff]  }
  0xb5   :  { %1759 = vmatpush1.bf16.msra.mxu1 %v2322_v16 }
  0xb6   :  { %1760 = vmatprep.subr.bf16.mxu1 %v2330_v17 }
  0xb7   :  { %1679 = vmatpush1.bf16.msra.mxu0 %v2325_v10  ;;  %v2388_v10 = vld [vmem:[#allocation7 + $0x228] ss:$16 sps:$4 sm:$0xff]  }
  0xb8   :  { %1680 = vmatprep.subr.bf16.mxu0 %v2333_v11 }
  0xb9   :  { %1761 = vmatpush1.bf16.msra.mxu1 %v2328_v20 }
  0xba   :  { %1762 = vmatprep.subr.bf16.mxu1 %v2336_v21  ;;  %v2399_v21 = vld [vmem:[#allocation7 + $0x264] ss:$16 sps:$4 sm:$0xff]  }
  0xbb   :  { %1681 = vmatpush1.bf16.msra.mxu0 %v2331_v14 }
  0xbc   :  { %1682 = vmatprep.subr.bf16.mxu0 %v2339_v15 }
  0xbd   :  { %1763 = vmatpush1.bf16.msra.mxu1 %v2334_v24  ;;  %v2397_v24 = vld [vmem:[#allocation7 + $0x260] ss:$16 sps:$4 sm:$0xff]  }
  0xbe   :  { %1764 = vmatprep.subr.bf16.mxu1 %v2342_v25  ;;  %v2400_v25 = vld [vmem:[#allocation7 + $0x268] ss:$16 sps:$4 sm:$0xff]  }
  0xbf   :  { %1683 = vmatpush1.bf16.msra.mxu0 %v2337_v18  ;;  %v2391_v18 = vld [vmem:[#allocation7 + $0x240] ss:$16 sps:$4 sm:$0xff]  }
  0xc0   :  { %1684 = vmatprep.subr.bf16.mxu0 %v2345_v19  ;;  %v2394_v19 = vld [vmem:[#allocation7 + $0x248] ss:$16 sps:$4 sm:$0xff]  }
  0xc1   :  { %1765 = vmatpush1.bf16.msra.mxu1 %v2340_v28  ;;  %v2403_v28 = vld [vmem:[#allocation7 + $0x280] ss:$16 sps:$4 sm:$0xff]  }
  0xc2   :  { %1766 = vmatprep.subr.bf16.mxu1 %v2348_v29  ;;  %v2406_v29 = vld [vmem:[#allocation7 + $0x288] ss:$16 sps:$4 sm:$0xff]  }
  0xc3   :  { %1685 = vmatpush1.bf16.msra.mxu0 %v2343_v22  ;;  %v2402_v22 = vld [vmem:[#allocation7 + $0x26c] ss:$16 sps:$4 sm:$0xff]  }
  0xc4   :  { %1686 = vmatprep.subr.bf16.mxu0 %v2351_v23 }
  0xc5   :  { %1767 = vmatpush1.bf16.msra.mxu1 %v2346_v32  ;;  %v2409_v32 = vld [vmem:[#allocation7 + $0x2a0] ss:$16 sps:$4 sm:$0xff]  }
  0xc6   :  { %1768 = vmatprep.subr.bf16.mxu1 %v2354_v33  ;;  %v2412_v33 = vld [vmem:[#allocation7 + $0x2a8] ss:$16 sps:$4 sm:$0xff]  }
  0xc7   :  { %1687 = vmatpush1.bf16.msra.mxu0 %v2349_v26  ;;  %v2405_v26 = vld [vmem:[#allocation7 + $0x284] ss:$16 sps:$4 sm:$0xff]  }
  0xc8   :  { %1688 = vmatprep.subr.bf16.mxu0 %v2357_v27  ;;  %v2408_v27 = vld [vmem:[#allocation7 + $0x28c] ss:$16 sps:$4 sm:$0xff]  }
  0xc9   :  { %1769 = vmatpush1.bf16.msra.mxu1 %v2352_v35  ;;  %v2420_v35 = vld [vmem:[#allocation7 + $0x2cc] ss:$16 sps:$4 sm:$0xff]  }
  0xca   :  { %1770 = vmatprep.subr.bf16.mxu1 %v2360_v36  ;;  %v2415_v36 = vld [vmem:[#allocation7 + $0x2c0] ss:$16 sps:$4 sm:$0xff]  }
  0xcb   :  { %1689 = vmatpush1.bf16.msra.mxu0 %v2355_v30  ;;  %v2411_v30 = vld [vmem:[#allocation7 + $0x2a4] ss:$16 sps:$4 sm:$0xff]  }
  0xcc   :  { %1690 = vmatprep.subr.bf16.mxu0 %v2363_v31  ;;  %v2414_v31 = vld [vmem:[#allocation7 + $0x2ac] ss:$16 sps:$4 sm:$0xff]  }
  0xcd   :  { %1771 = vmatpush1.bf16.msra.mxu1 %v2358_v37  ;;  %v2418_v37 = vld [vmem:[#allocation7 + $0x2c8] ss:$16 sps:$4 sm:$0xff]  }
  0xce   :  { %1772 = vmatprep.subr.bf16.mxu1 %v2366_v38  ;;  %v2423_v38 = vld [vmem:[#allocation7 + $0x2e4] ss:$16 sps:$4 sm:$0xff]  }
  0xcf   :  { %1691 = vmatpush1.bf16.msra.mxu0 %v2361_v34  ;;  %v2417_v34 = vld [vmem:[#allocation7 + $0x2c4] ss:$16 sps:$4 sm:$0xff]  }
  0xd0   :  { %1692 = vmatprep.subr.bf16.mxu0 %v2369_v40  ;;  %v2421_v40 = vld [vmem:[#allocation7 + $0x2e0] ss:$16 sps:$4 sm:$0xff]  }
  0xd1   :  { %1773 = vmatpush1.bf16.msra.mxu1 %v2364_v39  ;;  %v2426_v39 = vld [vmem:[#allocation7 + $0x2ec] ss:$16 sps:$4 sm:$0xff]  }
  0xd2   :  { %1774 = vmatprep.subr.bf16.mxu1 %v2372_v41  ;;  %v2424_v41 = vld [vmem:[#allocation7 + $0x2e8] ss:$16 sps:$4 sm:$0xff]  }
  0xd3   :  { %1693 = vmatpush1.bf16.msra.mxu0 %v2367_v42  ;;  %v2429_v42 = vld [vmem:[#allocation7 + $0x304] ss:$16 sps:$4 sm:$0xff]  }
  0xd4   :  { %1694 = vmatprep.subr.bf16.mxu0 %v2375_v44  ;;  %v2427_v44 = vld [vmem:[#allocation7 + $0x300] ss:$16 sps:$4 sm:$0xff]  }
  0xd5   :  { %1775 = vmatpush1.bf16.msra.mxu1 %v2370_v43  ;;  %v2432_v43 = vld [vmem:[#allocation7 + $0x30c] ss:$16 sps:$4 sm:$0xff]  }
  0xd6   :  { %1776 = vmatprep.subr.bf16.mxu1 %v2378_v45  ;;  %v2430_v45 = vld [vmem:[#allocation7 + $0x308] ss:$16 sps:$4 sm:$0xff]  }
  0xd7   :  { %1695 = vmatpush1.bf16.msra.mxu0 %v2373_v46  ;;  %v2435_v46 = vld [vmem:[#allocation7 + $0x324] ss:$16 sps:$4 sm:$0xff]  }
  0xd8   :  { %1705 = vmatprep.subr.bf16.mxu0 %v2381_v48  ;;  %v2433_v48 = vld [vmem:[#allocation7 + $0x320] ss:$16 sps:$4 sm:$0xff]  }
  0xd9   :  { %1777 = vmatpush1.bf16.msra.mxu1 %v2376_v47  ;;  %v2438_v47 = vld [vmem:[#allocation7 + $0x32c] ss:$16 sps:$4 sm:$0xff]  }
  0xda   :  { %1787 = vmatprep.subr.bf16.mxu1 %v2384_v49  ;;  %v2436_v49 = vld [vmem:[#allocation7 + $0x328] ss:$16 sps:$4 sm:$0xff]  }
 0x16d   :  { %v777_v57 = vpop.f32.mrb[0].mxu0 }
 0x16e   :  { %v2106_v58 = vadd.f32 %v777_v57, %v178_v55  ;;  %v779_v59 = vpop.f32.mrb[1].mxu0  ;;  %v2444_v55 = vld [vmem:[#allocation7 + $0x34c] ss:$16 sps:$4 sm:$0xff]   ;;  %v2442_v57 = vld [vmem:[#allocation7 + $0x348] ss:$16 sps:$4 sm:$0xff]  }
 0x16f   :  { %v2107_v60 = vadd.f32 %v779_v59, %v182_v56  ;;  %v781_v61 = vpop.f32.mrb[2].mxu0  ;;  %v2660_v11 = vpop.f32.mrb[0].mxu1  ;;  %v2439_v56 = vld [vmem:[#allocation7 + $0x340] ss:$16 sps:$4 sm:$0xff]   ;;  %v2450_v59 = vld [vmem:[#allocation7 + $0x36c] ss:$16 sps:$4 sm:$0xff]  }
 0x170   :  { %v866_v62 = vmax.f32 %v2106_v58, 0.0  ;;  %v782_v63 = vpop.f32.mrb[3].mxu0  ;;  %v861_v14 = vpop.f32.mrb[1].mxu1  ;;  %v2447_v58 = vld [vmem:[#allocation7 + $0x364] ss:$16 sps:$4 sm:$0xff]  }
 0x171   :  { %v867_v0 = vmax.f32 %v2107_v60, 0.0  ;;  %v2109_v15 = vadd.f32 %v861_v14, %v190_v8  ;;  %v863_v16 = vpop.f32.mrb[2].mxu1  ;;  %v2445_v60 = vld [vmem:[#allocation7 + $0x360] ss:$16 sps:$4 sm:$0xff]   ;;  %v2448_v61 = vld [vmem:[#allocation7 + $0x368] ss:$16 sps:$4 sm:$0xff]  }
 0x172   :  { %v870_v5 = vpack.c.bf16 %v866_v62, %v866_v62  ;;  %v864_v17 = vpop.f32.mrb[3].mxu1  ;;  %v2453_v62 = vld [vmem:[#allocation7 + $0x384] ss:$16 sps:$4 sm:$0xff]   ;;  %v2456_v63 = vld [vmem:[#allocation7 + $0x38c] ss:$16 sps:$4 sm:$0xff]  }
 0x173   :  { %v871_v2 = vpack.c.bf16 %v867_v0, %v867_v0  ;;  %v869_v20 = vmax.f32 %v2109_v15, 0.0  ;;  %v2451_v0 = vld [vmem:[#allocation7 + $0x380] ss:$16 sps:$4 sm:$0xff]   ;;  %v2471_v14 = vld [vmem:[#allocation7 + $0x3e4] ss:$16 sps:$4 sm:$0xff]  }
 0x174   :  { %v2474_v15 = vld [vmem:[#allocation7 + $0x3ec] ss:$16 sps:$4 sm:$0xff]   ;;  %v2469_v16 = vld [vmem:[#allocation7 + $0x3e0] ss:$16 sps:$4 sm:$0xff]   ;;  %v2472_v17 = vld [vmem:[#allocation7 + $0x3e8] ss:$16 sps:$4 sm:$0xff]  }
 0x175   :  { %1696 = vmatprep.mubr.bf16.mxu0 %v871_v2  ;;  %1778 = vmatprep.mubr.bf16.mxu1 %v871_v2  ;;  %v873_v23 = vpack.c.bf16 %v869_v20, %v869_v20  ;;  %v2454_v2 = vld [vmem:[#allocation7 + $0x388] ss:$16 sps:$4 sm:$0xff]  }
 0x176   :  { %1697 = vmatmul.mubr.bf16.vlgmr.msra.gmra.mrb[4].mxu0 %v870_v5  ;;  %1779 = vmatmul.mubr.bf16.vlgmr.msra.gmra.mrb[4].mxu1 %v870_v5  ;;  %v2462_v5 = vld [vmem:[#allocation7 + $0x3ac] ss:$16 sps:$4 sm:$0xff]  }
 0x177   :  { %1706 = vmatpush1.bf16.msra.mxu0 %v2379_v3  ;;  %1788 = vmatpush1.bf16.msra.mxu1 %v2382_v4  ;;  %v2663_v3 = vsub.s32 2, %v2638_v51  ;;  %v2459_v4 = vld [vmem:[#allocation7 + $0x3a4] ss:$16 sps:$4 sm:$0xff]   ;;  %v2466_v51 = vld [vmem:[#allocation7 + $0x3c8] ss:$16 sps:$4 sm:$0xff]  }
 0x178   :  { %1707 = vmatprep.subr.bf16.mxu0 %v2387_v6  ;;  %1789 = vmatprep.subr.bf16.mxu1 %v2390_v7  ;;  %v2457_v6 = vld [vmem:[#allocation7 + $0x3a0] ss:$16 sps:$4 sm:$0xff]   ;;  %v2460_v7 = vld [vmem:[#allocation7 + $0x3a8] ss:$16 sps:$4 sm:$0xff]  }
 0x179   :  { %1737 = vmatprep.mubr.bf16.mxu0 %v873_v23  ;;  %1819 = vmatprep.mubr.bf16.mxu1 %v873_v23  ;;  %v186_v8 = vrot.slane %v2646_v53, %v2663_v3 }
 0x17b   :  { %1708 = vmatpush1.bf16.msra.mxu0 %v2385_v9  ;;  %1790 = vmatpush1.bf16.msra.mxu1 %v2388_v10  ;;  %v2465_v9 = vld [vmem:[#allocation7 + $0x3c4] ss:$16 sps:$4 sm:$0xff]   ;;  %v2468_v10 = vld [vmem:[#allocation7 + $0x3cc] ss:$16 sps:$4 sm:$0xff]  }
 0x17c   :  { %1709 = vmatprep.subr.bf16.mxu0 %v2393_v12  ;;  %1791 = vmatprep.subr.bf16.mxu1 %v2396_v13  ;;  %v2463_v12 = vld [vmem:[#allocation7 + $0x3c0] ss:$16 sps:$4 sm:$0xff]   ;;  %v2108_v13 = vadd.f32 %v2660_v11, %v186_v8 }
 0x17d   :  { %v1002_v11 = vld [vmem:[%s2692_s4] sm:$0xf] }
 0x17e   :  { %v1015_v20 = vrot.slane %v1002_v11, %v2663_v3  ;;  %v1019_v23 = vrot.slane %v1002_v11, %v2656_v1 }
 0x17f   :  { %1710 = vmatpush1.bf16.msra.mxu0 %v2391_v18  ;;  %1792 = vmatpush1.bf16.msra.mxu1 %v2394_v19  ;;  %v868_v18 = vmax.f32 %v2108_v13, 0.0  ;;  %v1007_v19 = vrot.slane %v1002_v11, %v2641_v52 }
 0x180   :  { %1711 = vmatprep.subr.bf16.mxu0 %v2399_v21  ;;  %1793 = vmatprep.subr.bf16.mxu1 %v2402_v22  ;;  %v1832_v21 = vld [vmem:[%s2693_s5] sm:$0xf]  ;;  %v1011_v22 = vrot.slane %v1002_v11, %v2649_v54 }
 0x181   :  { %v872_v53 = vpack.c.bf16 %v868_v18, %v868_v18 }
 0x183   :  { %1712 = vmatpush1.bf16.msra.mxu0 %v2397_v24  ;;  %1794 = vmatpush1.bf16.msra.mxu1 %v2400_v25 }
 0x184   :  { %1713 = vmatprep.subr.bf16.mxu0 %v2405_v26  ;;  %1795 = vmatprep.subr.bf16.mxu1 %v2408_v27  ;;  %v1837_v27 = vrot.slane %v1832_v21, %v2641_v52  ;;  %v1849_v52 = vrot.slane %v1832_v21, %v2656_v1 }
 0x187   :  { %1714 = vmatpush1.bf16.msra.mxu0 %v2403_v28  ;;  %1796 = vmatpush1.bf16.msra.mxu1 %v2406_v29 }
 0x188   :  { %1715 = vmatprep.subr.bf16.mxu0 %v2411_v30  ;;  %1797 = vmatprep.subr.bf16.mxu1 %v2414_v31 }
 0x18b   :  { %1716 = vmatpush1.bf16.msra.mxu0 %v2409_v32  ;;  %1798 = vmatpush1.bf16.msra.mxu1 %v2412_v33  ;;  %v1841_v32 = vrot.slane %v1832_v21, %v2649_v54 }
 0x18c   :  { %1717 = vmatprep.subr.bf16.mxu0 %v2417_v34  ;;  %1799 = vmatprep.subr.bf16.mxu1 %v2420_v35 }
 0x18f   :  { %1718 = vmatpush1.bf16.msra.mxu0 %v2415_v36  ;;  %1800 = vmatpush1.bf16.msra.mxu1 %v2418_v37 }
 0x190   :  { %1719 = vmatprep.subr.bf16.mxu0 %v2423_v38  ;;  %1801 = vmatprep.subr.bf16.mxu1 %v2426_v39 }
 0x193   :  { %1720 = vmatpush1.bf16.msra.mxu0 %v2421_v40  ;;  %1802 = vmatpush1.bf16.msra.mxu1 %v2424_v41  ;;  %v1845_v40 = vrot.slane %v1832_v21, %v2663_v3 }
 0x194   :  { %1721 = vmatprep.subr.bf16.mxu0 %v2429_v42  ;;  %1803 = vmatprep.subr.bf16.mxu1 %v2432_v43 }
 0x197   :  { %1722 = vmatpush1.bf16.msra.mxu0 %v2427_v44  ;;  %1804 = vmatpush1.bf16.msra.mxu1 %v2430_v45 }
 0x198   :  { %1723 = vmatprep.subr.bf16.mxu0 %v2435_v46  ;;  %1805 = vmatprep.subr.bf16.mxu1 %v2438_v47 }
 0x19b   :  { %1724 = vmatpush1.bf16.msra.mxu0 %v2433_v48  ;;  %1806 = vmatpush1.bf16.msra.mxu1 %v2436_v49  ;;  %v1864_v49 = vstv %s2694_s6 }
 0x19c   :  { %1725 = vmatprep.subr.bf16.mxu0 %v2441_v50  ;;  %1807 = vmatprep.subr.bf16.mxu1 %v2444_v55 }
 0x19f   :  { %1726 = vmatpush1.bf16.msra.mxu0 %v2439_v56  ;;  %1808 = vmatpush1.bf16.msra.mxu1 %v2442_v57 }
 0x1a0   :  { %1727 = vmatprep.subr.bf16.mxu0 %v2447_v58  ;;  %1809 = vmatprep.subr.bf16.mxu1 %v2450_v59 }
 0x1a3   :  { %1728 = vmatpush1.bf16.msra.mxu0 %v2445_v60  ;;  %1810 = vmatpush1.bf16.msra.mxu1 %v2448_v61 }
 0x1a4   :  { %1729 = vmatprep.subr.bf16.mxu0 %v2453_v62  ;;  %1811 = vmatprep.subr.bf16.mxu1 %v2456_v63 }
 0x1a7   :  { %1730 = vmatpush1.bf16.msra.mxu0 %v2451_v0  ;;  %1812 = vmatpush1.bf16.msra.mxu1 %v2454_v2 }
 0x1a8   :  { %1731 = vmatprep.subr.bf16.mxu0 %v2459_v4  ;;  %1813 = vmatprep.subr.bf16.mxu1 %v2462_v5 }
 0x1ab   :  { %1732 = vmatpush1.bf16.msra.mxu0 %v2457_v6  ;;  %1814 = vmatpush1.bf16.msra.mxu1 %v2460_v7 }
 0x1ac   :  { %1733 = vmatprep.subr.bf16.mxu0 %v2465_v9  ;;  %1815 = vmatprep.subr.bf16.mxu1 %v2468_v10 }
 0x1af   :  { %1734 = vmatpush1.bf16.msra.mxu0 %v2463_v12  ;;  %1816 = vmatpush1.bf16.msra.mxu1 %v2466_v51 }
 0x1b0   :  { %1735 = vmatprep.subr.bf16.mxu0 %v2471_v14  ;;  %1817 = vmatprep.subr.bf16.mxu1 %v2474_v15 }
 0x1b3   :  { %1736 = vmatpush1.bf16.msra.mxu0 %v2469_v16  ;;  %1818 = vmatpush1.bf16.msra.mxu1 %v2472_v17 }
 0x1b6   :  { %1738 = vmatmul.mubr.bf16.vlgmr.msra.gmra.mrb[4].mxu0 %v872_v53  ;;  %1820 = vmatmul.mubr.bf16.vlgmr.msra.gmra.mrb[4].mxu1 %v872_v53 }
 0x289   :  { %v1739_v24 = vpop.f32.mrb[4].mxu0  ;;  %v1821_v25 = vpop.f32.mrb[4].mxu1 }
 0x28a   :  { %v2110_v26 = vadd.f32 %v1739_v24, %v1007_v19  ;;  %v2112_v28 = vadd.f32 %v1821_v25, %v1015_v20  ;;  %v1741_v29 = vpop.f32.mrb[5].mxu0  ;;  %v1823_v30 = vpop.f32.mrb[5].mxu1 }
 0x28b   :  { %v2111_v31 = vadd.f32 %v1741_v29, %v1011_v22  ;;  %v2113_v33 = vadd.f32 %v1823_v30, %v1019_v23  ;;  %v1743_v34 = vpop.f32.mrb[6].mxu0  ;;  %v1825_v35 = vpop.f32.mrb[6].mxu1 }
 0x28c   :  { %v1828_v36 = vmax.f32 %v2110_v26, 0.0  ;;  %v1744_v37 = vpop.f32.mrb[7].mxu0  ;;  %v1826_v38 = vpop.f32.mrb[7].mxu1  ;;  %v1830_v39 = vmax.f32 %v2112_v28, 0.0 }
 0x28d   :  { %v1829_v41 = vmax.f32 %v2111_v31, 0.0  ;;  %v1831_v44 = vmax.f32 %v2113_v33, 0.0 }
 0x28e   :  { %v1854_v42 = vmul.f32 %v1837_v27, %v1828_v36  ;;  %v1856_v45 = vmul.f32 %v1845_v40, %v1830_v39 }
 0x28f   :  { %v1855_v43 = vmul.f32 %v1841_v32, %v1829_v41  ;;  %v1857_v47 = vmul.f32 %v1849_v52, %v1831_v44 }
 0x291   :  { %v1858_v46 = vadd.f32 %v1855_v43, %v1854_v42 }
 0x293   :  { %v1859_v48 = vadd.f32 %v1858_v46, %v1856_v45 }
 0x295   :  { %v1860_v54 = vadd.f32 %v1859_v48, %v1857_v47 }
 0x297   :  { %1861 = vadd.xlane.f32.xlu0 %v1860_v54 }
 0x324   :  { %v1862_v50 = vpop.xlane.xlu0 %1861 }
 0x325   :  { %v1865_v55 = vadd.f32 %v1864_v49, %v1862_v50 }
 0x327   :  { %1867 = vst.msk [vmem:[%s2695_s7] sm:$0xff] %vm1866_vm2, %v1865_v55 }
 0x328   :  { %1872 = vsyncpa [#allocation4], 1 }
 0x329   :  { %1873 = vsyncpa [#allocation6], 1 }

</bundles_post_ra>
